<compile_context>
chip_gen: v6e
topology: v6e:2x2x1
jax: 0.10.0
libtpu: 0.0.40
codegen_flags: <defaults>
</compile_context>

<pallas_src>
import math

import jax
import jax.numpy as jnp
from jax.experimental import pallas as pl
from jax.experimental.pallas import tpu as pltpu


# ----------------------------- Pallas kernel ------------------------------ #
def _copy_kernel(x_ref, o_ref):
    # Identity copy of the current VMEM tile (the reshape is metadata-only;
    # a flat row-major copy realizes the new view).
    o_ref[...] = x_ref[...]


# Total VMEM budget for the pipelined tiles: 2 arrays (in + out) x 2 buffers.
_VMEM_TILE_BUDGET = 16 * 1024 * 1024   # 16 MiB total -> 4 MiB per tile
_VMEM_LIMIT_BYTES = 32 * 1024 * 1024   # safe on v5e/v6e (128 MiB) and v7x (64 MiB)
_MAX_COL_BLOCK = 4096                  # lane-dense column extent (multiple of 128)
_MAX_ROW_BLOCK = 1024


def _sublane_multiple(itemsize: int) -> int:
    # Minimum second-to-last tile dim per dtype packing.
    return {4: 8, 2: 16, 1: 32}.get(itemsize, 8)


def _factor_lane_dense(n: int):
    """Factor n == rows * cols with cols a multiple of 128 (cols <= 4096).

    Prefers the largest such cols that still leaves rows >= 8; n is guaranteed
    to be a multiple of 128 by the caller, so cols == 128 always works.
    """
    best = None
    best_with_rows = None
    limit = min(n, _MAX_COL_BLOCK)
    for c in range(128, limit + 1, 128):
        if n % c == 0:
            best = c
            if n // c >= 8:
                best_with_rows = c
    cols = best_with_rows if best_with_rows is not None else best
    assert cols is not None, "caller must pad n to a multiple of 128"
    return n // cols, cols


def _pallas_copy_flat(x1d: jax.Array) -> jax.Array:
    """Identity copy of a 1-D array through a lane-dense tiled Pallas kernel."""
    flat = x1d.shape[0]
    itemsize = jnp.dtype(x1d.dtype).itemsize
    sublane = _sublane_multiple(itemsize)

    # Pad the tail so the flattened size is a multiple of 128 (rare path);
    # keeps every store an unmasked, lane-dense vst.
    pad = (-flat) % 128
    xp = jnp.pad(x1d, (0, pad)) if pad else x1d
    n = flat + pad

    rows, cols = _factor_lane_dense(n)

    # Budget-driven row tile: 2 arrays x 2 pipeline buffers of (row_block, cols).
    per_tile_bytes = _VMEM_TILE_BUDGET // 4
    row_block = max(per_tile_bytes // (cols * itemsize), sublane)
    row_block = min(row_block, _MAX_ROW_BLOCK, rows)
    if row_block < rows:
        # Round to the dtype sublane multiple; full-extent blocks are exempt.
        row_block = max((row_block // sublane) * sublane, sublane)

    x2 = xp.reshape(rows, cols)
    grid = (pl.cdiv(rows, row_block),)

    out2 = pl.pallas_call(
        _copy_kernel,
        out_shape=jax.ShapeDtypeStruct((rows, cols), x1d.dtype),
        grid_spec=pltpu.PrefetchScalarGridSpec(
            num_scalar_prefetch=0,
            grid=grid,
            in_specs=[pl.BlockSpec((row_block, cols), lambda i: (i, 0))],
            out_specs=pl.BlockSpec((row_block, cols), lambda i: (i, 0)),
        ),
        compiler_params=pltpu.CompilerParams(
            dimension_semantics=("parallel",),
            vmem_limit_bytes=_VMEM_LIMIT_BYTES,
        ),
    )(x2)

    out1d = out2.reshape(n)
    return out1d[:flat] if pad else out1d


def view_forward(x: jax.Array, shape) -> jax.Array:
    """out = x.view(x.shape[0], *shape)  (PyTorch View semantics, incl. -1)."""
    batch = x.shape[0]
    flat = math.prod(x.shape)
    per_batch = flat // batch

    shape = tuple(int(s) for s in shape)
    if -1 in shape:
        assert shape.count(-1) == 1, "only one -1 allowed in View shape"
        known = math.prod(s for s in shape if s != -1)
        assert known > 0 and per_batch % known == 0, "View shape incompatible with input"
        shape = tuple(per_batch // known if s == -1 else s for s in shape)
    assert math.prod(shape) == per_batch, "View shape incompatible with input"
    out_shape = (batch,) + shape

    flat_x = x.reshape(flat)               # metadata-only (row-major)
    out_flat = _pallas_copy_flat(flat_x)   # data movement in Pallas
    return out_flat.reshape(out_shape)     # metadata-only (row-major)


# ------------------------------ View module -------------------------------- #
class View:
    """JAX/Pallas equivalent of the PyTorch View module."""

    def __init__(self, shape):
        self.shape = tuple(shape)

    def __call__(self, x):
        return view_forward(x, self.shape)


# ---------------------------------- main ----------------------------------- #
if __name__ == "__main__":
    key = jax.random.PRNGKey(0)

    B, C, H, W = 2, 4, 16, 16            # NCHW, matches the Diffusion block usage
    x = jax.random.normal(key, (B, C, H, W), jnp.float32)

    # Flatten all non-batch dims (typical View((-1,)) usage).
    view_flat = View((-1,))
    out = view_flat(x)
    out = jax.block_until_ready(out)
    ref = x.reshape(B, -1)
    assert out.shape == (B, C * H * W) and out.dtype == x.dtype
    assert jnp.array_equal(out, ref)

    # Multi-dim target shape.
    view_3d = View((C * H, W))
    out2 = jax.block_until_ready(view_3d(x))
    ref2 = x.reshape(B, C * H, W)
    assert out2.shape == (B, C * H, W)
    assert jnp.array_equal(out2, ref2)

    print("KERNEL_OK")
</pallas_src>

<mosaic_0001>
module attributes {stable_mosaic.version = 11 : i64} {
  func.func @_copy_kernel(%arg0: i32, %arg1: memref<8x256xf32, #tpu.memory_space<vmem>>, %arg2: memref<8x256xf32, #tpu.memory_space<vmem>>) attributes {dimension_semantics = [#tpu.dimension_semantics<parallel>], iteration_bounds = array<i64: 1>, scalar_prefetch = 0 : i64, scratch_operands = 0 : i64, tpu.core_type = #tpu.core_type<tc>, window_params = [{transform_indices = @transform_0, window_bounds = array<i64: 8, 256>}, {transform_indices = @transform_1, window_bounds = array<i64: 8, 256>}]} {
    %c0 = arith.constant 0 : index
    %c0_0 = arith.constant 0 : index
    %0 = vector.load %arg1[%c0, %c0_0] : memref<8x256xf32, #tpu.memory_space<vmem>>, vector<8x256xf32>
    %c0_1 = arith.constant 0 : index
    %c0_2 = arith.constant 0 : index
    %1 = vector.load %arg2[%c0_1, %c0_2] : memref<8x256xf32, #tpu.memory_space<vmem>>, vector<8x256xf32>
    tpu.vector_store %arg2[%c0_1, %c0_2], %0 {strides = array<i32>} : memref<8x256xf32, #tpu.memory_space<vmem>>, vector<8x256xf32>,
    return
  }
  func.func @transform_0(%arg0: i32) -> (i32, i32) {
    %c0_i32 = arith.constant 0 : i32
    %c0_i32_0 = arith.constant 0 : i32
    return %arg0, %c0_i32 : i32, i32
  }
  func.func @transform_1(%arg0: i32) -> (i32, i32) {
    %c0_i32 = arith.constant 0 : i32
    %c0_i32_0 = arith.constant 0 : i32
    return %arg0, %c0_i32 : i32, i32
  }
}

</mosaic_0001>

<bundles_post_ra>
// kernel: tpu_custom_call.1
= control target key start
LH: loop header
LB: loop body
LE: loop exit
PB: predicated region body
PF: predicated region fallthrough
CT: control target
= control target key end

     0   :  { %6 = vsyncpa [#allocation3], 0  ;;  %s104_s0 = inlined_call_operand.hbm [shape: f32[8,256], index: 0, kind: input, shape index: {}]   ;;  %s105_s1 = inlined_call_operand.hbm [shape: f32[8,256], index: 1, kind: output, shape index: {}]  }
   0x1   :  { %7 = vsyncpa [#allocation4], 0  ;;  %s86_s6 = smov [#allocation2]  }
   0x2   :  { %s14_s7 = sshll.u32 %s86_s6, 4  ;;  %s15_s7 = int_to_ptr.vmem [resolvable:$true] %s14_s7 }
   0x3   :  { %s50_s8 = scalar_lea.vmem %s15_s7, 256  ;;  %p55_p1 = scmp.lt.s32.totalorder %s15_s7, %s15_s7 }
   0x4   :  { %p51_p0 = scmp.ne.s32.totalorder %s15_s7, %s50_s8  ;;  %p56_p2 = scmp.lt.s32.totalorder %s50_s8, %s50_s8 }
   0x6   :  { %p57_p3 = por %p56_p2, %p55_p1 }
   0x8   :  { %p58_p4 = pnand %p57_p3, %p51_p0 }
   0xa   :  { %61 = shalt.err (!%p58_p4)
}
   0xb   :  { %17 = dma.hbm_to_vmem [thread:$0]  %s104_s0, 256, %s15_s7, [#allocation3]  }
   0xc   :  { %82 = dma.done.wait [#allocation3], 256  }
   0xd   :  { %83 = vsyncadd [#allocation3], 4294967040  ;;  %s87_s11 = smov [#allocation5]   ;;  %v21_v0 = vld [vmem:[#allocation2] sm:$0xff]  ;;  %v22_v1 = vld [vmem:[#allocation2 + $0x8] sm:$0xff] }
   0xe   :  { %s31_s12 = sshll.u32 %s87_s11, 4  ;;  %23 = vst [vmem:[#allocation5] sm:$0xff] %v21_v0  ;;  %24 = vst [vmem:[#allocation5 + $0x8] sm:$0xff] %v22_v1  ;;  %s32_s12 = int_to_ptr.vmem [resolvable:$true] %s31_s12 }
   0xf   :  { %s62_s13 = scalar_lea.vmem %s32_s12, 256  ;;  %p67_p6 = scmp.lt.s32.totalorder %s32_s12, %s32_s12 }
  0x10   :  { %p63_p5 = scmp.ne.s32.totalorder %s32_s12, %s62_s13  ;;  %p68_p7 = scmp.lt.s32.totalorder %s62_s13, %s62_s13 }
  0x12   :  { %p69_p8 = por %p68_p7, %p67_p6 }
  0x14   :  { %p70_p9 = pnand %p69_p8, %p63_p5 }
  0x16   :  { %73 = shalt.err (!%p70_p9)
}
  0x17   :  { %34 = dma.vmem_to_hbm [thread:$0]  %s32_s12, 256, %s105_s1, [#allocation4]  }
  0x18   :  { %84 = dma.done.wait [#allocation4], 256  }
  0x19   :  { %85 = vsyncadd [#allocation4], 4294967040 }
  0x1a   :  { %38 = vsyncpa [#allocation3], 1 }
  0x1b   :  { %39 = vsyncpa [#allocation4], 1 }

</bundles_post_ra>
